<compile_context>
chip_gen: v7x
topology: tpu7x:2x2x1
jax: 0.10.0
libtpu: 0.0.40
codegen_flags: <defaults>
</compile_context>

<pallas_src>
import functools

import jax
import jax.numpy as jnp
import numpy as np
from jax import lax
from jax.experimental import pallas as pl
from jax.experimental.pallas import tpu as pltpu


def _conv_tap_accum_kernel(x_ref, w_ref, b_ref, o_ref, *,
                           KH, KW, sh, sw, Cin, Wph, function):
    """Direct convolution of one image with an in-kernel KH*KW tap reduction.

    x_ref : [1, sh*sw*Cin, Lx]   phase-decomposed, spatially-flattened padded image
    w_ref : [KH*KW, Cout, Cin]   resident filter (one [Cout, Cin] matrix per tap)
    b_ref : [Cout, 1]            f32 bias
    o_ref : [1, Cout, OH*Wph]    NCHW-flat output (junk cols >= OW per row are
                                 sliced away in the wrapper)
    """
    Lout = o_ref.shape[-1]
    acc = jnp.zeros(o_ref.shape[1:], jnp.float32)                 # [Cout, Lout]
    for kh in range(KH):
        for kw in range(KW):
            t = kh * KW + kw
            # Phase-channel block + flat spatial offset for this tap (all static).
            ch0 = ((kh % sh) * sw + (kw % sw)) * Cin
            off = (kh // sh) * Wph + (kw // sw)
            x_t = x_ref[0, ch0:ch0 + Cin, off:off + Lout]         # [Cin, Lout]
            # One MXU contraction per tap, accumulated in f32.
            acc = acc + jnp.dot(w_ref[t], x_t,
                                preferred_element_type=jnp.float32)
    # Fused bias + activation epilogue in f32, then a single store.
    o_ref[0] = function(acc + b_ref[...]).astype(o_ref.dtype)


def conv2d_pallas(x_nchw, w_oihw, b, *, stride=(1, 1), padding=0,
                  function=lambda u: u, compute_dtype=jnp.float32):
    """Equivalent of `function(F.conv2d(x, W, bias=b, stride, padding))` (NCHW/OIHW)."""
    N, Cin, H, W = x_nchw.shape
    Cout, _, KH, KW = w_oihw.shape
    if isinstance(stride, (tuple, list)):
        sh, sw = int(stride[0]), int(stride[1])
    else:
        sh = sw = int(stride)
    if isinstance(padding, (tuple, list)):
        ph, pw = int(padding[0]), int(padding[1])
    else:
        ph = pw = int(padding)

    Hp, Wp = H + 2 * ph, W + 2 * pw
    OH = (Hp - KH) // sh + 1
    OW = (Wp - KW) // sw + 1
    assert OH > 0 and OW > 0, "filter larger than padded input"

    # ---- Wrapper-side layout plumbing: ONE input-sized pass (pad + space-to-
    # depth phase split), NOT an im2col.  For stride 1 the phase split is a
    # no-op and this reduces to zero-padding + a free spatial flatten. --------
    Hph = -(-Hp // sh)          # per-phase padded height
    Wph = -(-Wp // sw)          # per-phase padded width
    x_pad = jnp.pad(x_nchw, ((0, 0), (0, 0),
                             (ph, ph + Hph * sh - Hp),
                             (pw, pw + Wph * sw - Wp)))
    x_ph = x_pad.reshape(N, Cin, Hph, sh, Wph, sw)
    x_ph = jnp.transpose(x_ph, (0, 3, 5, 1, 2, 4))     # [N, sh, sw, Cin, Hph, Wph]
    x_ph = x_ph.reshape(N, sh * sw * Cin, Hph * Wph)

    # Flat-index reach of the largest tap offset (including the discarded junk
    # columns of the last output row) -> pad so every in-kernel slice is in bounds.
    Lout = OH * Wph
    Lx = max(Hph * Wph, ((KH - 1) // sh + OH) * Wph + (KW - 1) // sw)
    if Lx > Hph * Wph:
        x_ph = jnp.pad(x_ph, ((0, 0), (0, 0), (0, Lx - Hph * Wph)))
    x_ph = x_ph.astype(compute_dtype)

    w_taps = jnp.transpose(w_oihw, (2, 3, 0, 1)).reshape(KH * KW, Cout, Cin)
    w_taps = w_taps.astype(compute_dtype)
    bias = b.astype(jnp.float32).reshape(Cout, 1)

    Cph = sh * sw * Cin
    kernel = functools.partial(_conv_tap_accum_kernel, KH=KH, KW=KW, sh=sh,
                               sw=sw, Cin=Cin, Wph=Wph, function=function)

    # TODO(synk): for very large images (per-image phase slab or the f32
    # accumulator no longer fitting VMEM) add an OH-block grid axis with a
    # 128-multiple output block; unnecessary at these shapes.
    # TODO(synk): batch=1 collapses the grid to a single step (one v7x TC idle);
    # in that regime split OH across a second "parallel" grid axis.
    out_flat = pl.pallas_call(
        kernel,
        out_shape=jax.ShapeDtypeStruct((N, Cout, Lout), x_nchw.dtype),
        grid=(N,),
        in_specs=[
            # One whole (phase-decomposed) image per grid step; read once.
            pl.BlockSpec((1, Cph, Lx), lambda n: (n, 0, 0)),
            # Weights + bias: whole-array blocks with constant index_map ->
            # resident in VMEM, DMA'd once (review: no per-tile re-fetch).
            pl.BlockSpec((KH * KW, Cout, Cin), lambda n: (0, 0, 0)),
            pl.BlockSpec((Cout, 1), lambda n: (0, 0)),
        ],
        out_specs=pl.BlockSpec((1, Cout, Lout), lambda n: (n, 0, 0)),
        compiler_params=pltpu.CompilerParams(
            # Batch images are independent -> megacore / dual-TC sharding.
            dimension_semantics=("parallel",),
            # Double-buffered image + output + resident weights are tiny here;
            # cap well under v7x's 64 MiB physical VMEM.
            vmem_limit_bytes=48 * 1024 * 1024,
        ),
    )(x_ph, w_taps, bias)

    # Free reshape + one narrow slice: output is already NCHW.  No Cout padding,
    # no [:M,:Cout] slice, no NHWC->NCHW transpose pass.
    return out_flat.reshape(N, Cout, OH, Wph)[:, :, :, :OW]


class ConvPallas:
    """Mirror of the PyTorch Conv module (same deterministic init)."""

    def __init__(self, filter_shape, function=lambda u: u, stride=(1, 1),
                 padding=0, compute_dtype=jnp.float32):
        rng = np.random.RandomState(1234)
        fan_in = filter_shape[1] * filter_shape[2] * filter_shape[3]
        bound = np.sqrt(6.0 / fan_in)
        self.W = jnp.asarray(
            rng.uniform(low=-bound, high=bound, size=filter_shape)
            .astype("float32"))
        self.b = jnp.zeros((filter_shape[0],), dtype=jnp.float32)
        self.function = function
        self.stride = stride
        self.padding = padding
        self.compute_dtype = compute_dtype

    def __call__(self, x):
        return conv2d_pallas(x, self.W, self.b, stride=self.stride,
                             padding=self.padding, function=self.function,
                             compute_dtype=self.compute_dtype)


if __name__ == "__main__":
    # Small shapes consistent with the module: NCHW input, OIHW filter.
    N, Cin, H, W = 2, 4, 16, 16
    Cout, KH, KW = 8, 3, 3

    key = jax.random.PRNGKey(0)
    x = jax.random.normal(key, (N, Cin, H, W), dtype=jnp.float32)

    def ref_conv(x_, w_, b_, stride, pad, fn):
        r = lax.conv_general_dilated(
            x_, w_, window_strides=stride, padding=((pad, pad), (pad, pad)),
            dimension_numbers=("NCHW", "OIHW", "NCHW"))
        return fn(r + b_.reshape(1, -1, 1, 1))

    # --- Config 1: identity activation, stride 1, padding 1 (f32 path). ------
    conv = ConvPallas((Cout, Cin, KH, KW), function=lambda u: u,
                      stride=(1, 1), padding=1)
    out = jax.block_until_ready(conv(x))
    ref = ref_conv(x, conv.W, conv.b, (1, 1), 1, lambda u: u)
    assert out.shape == (N, Cout, H, W)
    np.testing.assert_allclose(np.asarray(out), np.asarray(ref),
                               rtol=1e-4, atol=1e-4)

    # --- Config 2: ReLU activation, stride 2, padding 1 (f32 path). ----------
    conv2 = ConvPallas((Cout, Cin, KH, KW), function=jax.nn.relu,
                       stride=(2, 2), padding=1)
    out2 = jax.block_until_ready(conv2(x))
    ref2 = ref_conv(x, conv2.W, conv2.b, (2, 2), 1, jax.nn.relu)
    np.testing.assert_allclose(np.asarray(out2), np.asarray(ref2),
                               rtol=1e-4, atol=1e-4)

    # --- Config 3: tanh activation, stride 1, padding 0 (f32 path). ----------
    conv3 = ConvPallas((Cout, Cin, KH, KW), function=jnp.tanh,
                       stride=(1, 1), padding=0)
    out3 = jax.block_until_ready(conv3(x))
    ref3 = ref_conv(x, conv3.W, conv3.b, (1, 1), 0, jnp.tanh)
    np.testing.assert_allclose(np.asarray(out3), np.asarray(ref3),
                               rtol=1e-4, atol=1e-4)

    # --- Config 4: bf16 MXU inputs + f32 accumulation (v6e/v7x feedback). ----
    out_bf16 = jax.block_until_ready(
        conv2d_pallas(x, conv.W, conv.b, stride=(1, 1), padding=1,
                      function=lambda u: u, compute_dtype=jnp.bfloat16))
    np.testing.assert_allclose(np.asarray(out_bf16), np.asarray(ref),
                               rtol=5e-2, atol=5e-2)

    print("KERNEL_OK")
</pallas_src>

<mosaic_0001>
module attributes {stable_mosaic.version = 11 : i64} {
  func.func @_conv_tap_accum_kernel(%arg0: i32, %arg1: memref<1x4x326xf32, #tpu.memory_space<vmem>>, %arg2: memref<9x8x4xf32, #tpu.memory_space<vmem>>, %arg3: memref<8x1xf32, #tpu.memory_space<vmem>>, %arg4: memref<1x8x288xf32, #tpu.memory_space<vmem>>) attributes {dimension_semantics = [#tpu.dimension_semantics<parallel>], iteration_bounds = array<i64: 2>, scalar_prefetch = 0 : i64, scratch_operands = 0 : i64, tpu.core_type = #tpu.core_type<tc>, window_params = [{transform_indices = @transform_0, window_bounds = array<i64: 1, 4, 326>}, {pipeline_mode = #tpu.pipeline_mode<synchronous>, transform_indices = @transform_1, window_bounds = array<i64: 9, 8, 4>}, {pipeline_mode = #tpu.pipeline_mode<synchronous>, transform_indices = @transform_2, window_bounds = array<i64: 8, 1>}, {transform_indices = @transform_3, window_bounds = array<i64: 1, 8, 288>}]} {
    %cst = arith.constant 0.000000e+00 : f32
    %0 = vector.broadcast %cst : f32 to vector<8x288xf32>
    %c0 = arith.constant 0 : index
    %c0_0 = arith.constant 0 : index
    %c0_1 = arith.constant 0 : index
    %1 = vector.load %arg1[%c0, %c0_0, %c0_1] : memref<1x4x326xf32, #tpu.memory_space<vmem>>, vector<1x4x288xf32>
    %2 = vector.shape_cast %1 : vector<1x4x288xf32> to vector<4x288xf32>
    %c0_2 = arith.constant 0 : index
    %c0_3 = arith.constant 0 : index
    %c0_4 = arith.constant 0 : index
    %3 = vector.load %arg2[%c0_2, %c0_3, %c0_4] : memref<9x8x4xf32, #tpu.memory_space<vmem>>, vector<1x8x4xf32>
    %4 = vector.shape_cast %3 : vector<1x8x4xf32> to vector<8x4xf32>
    %cst_5 = arith.constant dense<0.000000e+00> : vector<8x288xf32>
    %5 = tpu.matmul %4, %2, %cst_5 {dimension_numbers = #tpu.dot_dimension_numbers<[1], [0], [0], [1], [0, 0, 1, 1], [], []>} : vector<8x4xf32>, vector<4x288xf32>, vector<8x288xf32> -> vector<8x288xf32>
    %6 = arith.addf %0, %5 : vector<8x288xf32>
    %c0_6 = arith.constant 0 : index
    %c0_7 = arith.constant 0 : index
    %c1 = arith.constant 1 : index
    %7 = vector.load %arg1[%c0_6, %c0_7, %c1] : memref<1x4x326xf32, #tpu.memory_space<vmem>>, vector<1x4x288xf32>
    %8 = vector.shape_cast %7 : vector<1x4x288xf32> to vector<4x288xf32>
    %c1_8 = arith.constant 1 : index
    %c0_9 = arith.constant 0 : index
    %c0_10 = arith.constant 0 : index
    %9 = vector.load %arg2[%c1_8, %c0_9, %c0_10] : memref<9x8x4xf32, #tpu.memory_space<vmem>>, vector<1x8x4xf32>
    %10 = vector.shape_cast %9 : vector<1x8x4xf32> to vector<8x4xf32>
    %cst_11 = arith.constant dense<0.000000e+00> : vector<8x288xf32>
    %11 = tpu.matmul %10, %8, %cst_11 {dimension_numbers = #tpu.dot_dimension_numbers<[1], [0], [0], [1], [0, 0, 1, 1], [], []>} : vector<8x4xf32>, vector<4x288xf32>, vector<8x288xf32> -> vector<8x288xf32>
    %12 = arith.addf %6, %11 : vector<8x288xf32>
    %c0_12 = arith.constant 0 : index
    %c0_13 = arith.constant 0 : index
    %c2 = arith.constant 2 : index
    %13 = vector.load %arg1[%c0_12, %c0_13, %c2] : memref<1x4x326xf32, #tpu.memory_space<vmem>>, vector<1x4x288xf32>
    %14 = vector.shape_cast %13 : vector<1x4x288xf32> to vector<4x288xf32>
    %c2_14 = arith.constant 2 : index
    %c0_15 = arith.constant 0 : index
    %c0_16 = arith.constant 0 : index
    %15 = vector.load %arg2[%c2_14, %c0_15, %c0_16] : memref<9x8x4xf32, #tpu.memory_space<vmem>>, vector<1x8x4xf32>
    %16 = vector.shape_cast %15 : vector<1x8x4xf32> to vector<8x4xf32>
    %cst_17 = arith.constant dense<0.000000e+00> : vector<8x288xf32>
    %17 = tpu.matmul %16, %14, %cst_17 {dimension_numbers = #tpu.dot_dimension_numbers<[1], [0], [0], [1], [0, 0, 1, 1], [], []>} : vector<8x4xf32>, vector<4x288xf32>, vector<8x288xf32> -> vector<8x288xf32>
    %18 = arith.addf %12, %17 : vector<8x288xf32>
    %c0_18 = arith.constant 0 : index
    %c0_19 = arith.constant 0 : index
    %c18 = arith.constant 18 : index
    %19 = vector.load %arg1[%c0_18, %c0_19, %c18] : memref<1x4x326xf32, #tpu.memory_space<vmem>>, vector<1x4x288xf32>
    %20 = vector.shape_cast %19 : vector<1x4x288xf32> to vector<4x288xf32>
    %c3 = arith.constant 3 : index
    %c0_20 = arith.constant 0 : index
    %c0_21 = arith.constant 0 : index
    %21 = vector.load %arg2[%c3, %c0_20, %c0_21] : memref<9x8x4xf32, #tpu.memory_space<vmem>>, vector<1x8x4xf32>
    %22 = vector.shape_cast %21 : vector<1x8x4xf32> to vector<8x4xf32>
    %cst_22 = arith.constant dense<0.000000e+00> : vector<8x288xf32>
    %23 = tpu.matmul %22, %20, %cst_22 {dimension_numbers = #tpu.dot_dimension_numbers<[1], [0], [0], [1], [0, 0, 1, 1], [], []>} : vector<8x4xf32>, vector<4x288xf32>, vector<8x288xf32> -> vector<8x288xf32>
    %24 = arith.addf %18, %23 : vector<8x288xf32>
    %c0_23 = arith.constant 0 : index
    %c0_24 = arith.constant 0 : index
    %c19 = arith.constant 19 : index
    %25 = vector.load %arg1[%c0_23, %c0_24, %c19] : memref<1x4x326xf32, #tpu.memory_space<vmem>>, vector<1x4x288xf32>
    %26 = vector.shape_cast %25 : vector<1x4x288xf32> to vector<4x288xf32>
    %c4 = arith.constant 4 : index
    %c0_25 = arith.constant 0 : index
    %c0_26 = arith.constant 0 : index
    %27 = vector.load %arg2[%c4, %c0_25, %c0_26] : memref<9x8x4xf32, #tpu.memory_space<vmem>>, vector<1x8x4xf32>
    %28 = vector.shape_cast %27 : vector<1x8x4xf32> to vector<8x4xf32>
    %cst_27 = arith.constant dense<0.000000e+00> : vector<8x288xf32>
    %29 = tpu.matmul %28, %26, %cst_27 {dimension_numbers = #tpu.dot_dimension_numbers<[1], [0], [0], [1], [0, 0, 1, 1], [], []>} : vector<8x4xf32>, vector<4x288xf32>, vector<8x288xf32> -> vector<8x288xf32>
    %30 = arith.addf %24, %29 : vector<8x288xf32>
    %c0_28 = arith.constant 0 : index
    %c0_29 = arith.constant 0 : index
    %c20 = arith.constant 20 : index
    %31 = vector.load %arg1[%c0_28, %c0_29, %c20] : memref<1x4x326xf32, #tpu.memory_space<vmem>>, vector<1x4x288xf32>
    %32 = vector.shape_cast %31 : vector<1x4x288xf32> to vector<4x288xf32>
    %c5 = arith.constant 5 : index
    %c0_30 = arith.constant 0 : index
    %c0_31 = arith.constant 0 : index
    %33 = vector.load %arg2[%c5, %c0_30, %c0_31] : memref<9x8x4xf32, #tpu.memory_space<vmem>>, vector<1x8x4xf32>
    %34 = vector.shape_cast %33 : vector<1x8x4xf32> to vector<8x4xf32>
    %cst_32 = arith.constant dense<0.000000e+00> : vector<8x288xf32>
    %35 = tpu.matmul %34, %32, %cst_32 {dimension_numbers = #tpu.dot_dimension_numbers<[1], [0], [0], [1], [0, 0, 1, 1], [], []>} : vector<8x4xf32>, vector<4x288xf32>, vector<8x288xf32> -> vector<8x288xf32>
    %36 = arith.addf %30, %35 : vector<8x288xf32>
    %c0_33 = arith.constant 0 : index
    %c0_34 = arith.constant 0 : index
    %c36 = arith.constant 36 : index
    %37 = vector.load %arg1[%c0_33, %c0_34, %c36] : memref<1x4x326xf32, #tpu.memory_space<vmem>>, vector<1x4x288xf32>
    %38 = vector.shape_cast %37 : vector<1x4x288xf32> to vector<4x288xf32>
    %c6 = arith.constant 6 : index
    %c0_35 = arith.constant 0 : index
    %c0_36 = arith.constant 0 : index
    %39 = vector.load %arg2[%c6, %c0_35, %c0_36] : memref<9x8x4xf32, #tpu.memory_space<vmem>>, vector<1x8x4xf32>
    %40 = vector.shape_cast %39 : vector<1x8x4xf32> to vector<8x4xf32>
    %cst_37 = arith.constant dense<0.000000e+00> : vector<8x288xf32>
    %41 = tpu.matmul %40, %38, %cst_37 {dimension_numbers = #tpu.dot_dimension_numbers<[1], [0], [0], [1], [0, 0, 1, 1], [], []>} : vector<8x4xf32>, vector<4x288xf32>, vector<8x288xf32> -> vector<8x288xf32>
    %42 = arith.addf %36, %41 : vector<8x288xf32>
    %c0_38 = arith.constant 0 : index
    %c0_39 = arith.constant 0 : index
    %c37 = arith.constant 37 : index
    %43 = vector.load %arg1[%c0_38, %c0_39, %c37] : memref<1x4x326xf32, #tpu.memory_space<vmem>>, vector<1x4x288xf32>
    %44 = vector.shape_cast %43 : vector<1x4x288xf32> to vector<4x288xf32>
    %c7 = arith.constant 7 : index
    %c0_40 = arith.constant 0 : index
    %c0_41 = arith.constant 0 : index
    %45 = vector.load %arg2[%c7, %c0_40, %c0_41] : memref<9x8x4xf32, #tpu.memory_space<vmem>>, vector<1x8x4xf32>
    %46 = vector.shape_cast %45 : vector<1x8x4xf32> to vector<8x4xf32>
    %cst_42 = arith.constant dense<0.000000e+00> : vector<8x288xf32>
    %47 = tpu.matmul %46, %44, %cst_42 {dimension_numbers = #tpu.dot_dimension_numbers<[1], [0], [0], [1], [0, 0, 1, 1], [], []>} : vector<8x4xf32>, vector<4x288xf32>, vector<8x288xf32> -> vector<8x288xf32>
    %48 = arith.addf %42, %47 : vector<8x288xf32>
    %c0_43 = arith.constant 0 : index
    %c0_44 = arith.constant 0 : index
    %c38 = arith.constant 38 : index
    %49 = vector.load %arg1[%c0_43, %c0_44, %c38] : memref<1x4x326xf32, #tpu.memory_space<vmem>>, vector<1x4x288xf32>
    %50 = vector.shape_cast %49 : vector<1x4x288xf32> to vector<4x288xf32>
    %c8 = arith.constant 8 : index
    %c0_45 = arith.constant 0 : index
    %c0_46 = arith.constant 0 : index
    %51 = vector.load %arg2[%c8, %c0_45, %c0_46] : memref<9x8x4xf32, #tpu.memory_space<vmem>>, vector<1x8x4xf32>
    %52 = vector.shape_cast %51 : vector<1x8x4xf32> to vector<8x4xf32>
    %cst_47 = arith.constant dense<0.000000e+00> : vector<8x288xf32>
    %53 = tpu.matmul %52, %50, %cst_47 {dimension_numbers = #tpu.dot_dimension_numbers<[1], [0], [0], [1], [0, 0, 1, 1], [], []>} : vector<8x4xf32>, vector<4x288xf32>, vector<8x288xf32> -> vector<8x288xf32>
    %54 = arith.addf %48, %53 : vector<8x288xf32>
    %c0_48 = arith.constant 0 : index
    %c0_49 = arith.constant 0 : index
    %55 = vector.load %arg3[%c0_48, %c0_49] : memref<8x1xf32, #tpu.memory_space<vmem>>, vector<8x1xf32>
    %56 = vector.broadcast %55 : vector<8x1xf32> to vector<8x288xf32>
    %57 = arith.addf %54, %56 : vector<8x288xf32>
    %c0_50 = arith.constant 0 : index
    %c0_51 = arith.constant 0 : index
    %c0_52 = arith.constant 0 : index
    %58 = vector.load %arg4[%c0_50, %c0_51, %c0_52] : memref<1x8x288xf32, #tpu.memory_space<vmem>>, vector<1x8x288xf32>
    %59 = vector.shape_cast %58 : vector<1x8x288xf32> to vector<8x288xf32>
    %60 = vector.shape_cast %57 : vector<8x288xf32> to vector<1x8x288xf32>
    tpu.vector_store %arg4[%c0_50, %c0_51, %c0_52], %60 {strides = array<i32>} : memref<1x8x288xf32, #tpu.memory_space<vmem>>, vector<1x8x288xf32>,
    return
  }
  func.func @transform_0(%arg0: i32) -> (i32, i32, i32) {
    %c0_i32 = arith.constant 0 : i32
    %c0_i32_0 = arith.constant 0 : i32
    %c0_i32_1 = arith.constant 0 : i32
    return %arg0, %c0_i32, %c0_i32_0 : i32, i32, i32
  }
  func.func @transform_1(%arg0: i32) -> (i32, i32, i32) {
    %c0_i32 = arith.constant 0 : i32
    %c0_i32_0 = arith.constant 0 : i32
    %c0_i32_1 = arith.constant 0 : i32
    %c0_i32_2 = arith.constant 0 : i32
    return %c0_i32, %c0_i32_0, %c0_i32_1 : i32, i32, i32
  }
  func.func @transform_2(%arg0: i32) -> (i32, i32) {
    %c0_i32 = arith.constant 0 : i32
    %c0_i32_0 = arith.constant 0 : i32
    %c0_i32_1 = arith.constant 0 : i32
    return %c0_i32, %c0_i32_0 : i32, i32
  }
  func.func @transform_3(%arg0: i32) -> (i32, i32, i32) {
    %c0_i32 = arith.constant 0 : i32
    %c0_i32_0 = arith.constant 0 : i32
    %c0_i32_1 = arith.constant 0 : i32
    return %arg0, %c0_i32, %c0_i32_0 : i32, i32, i32
  }
}

</mosaic_0001>

<bundles_post_ra>
// kernel: tpu_custom_call.1
= control target key start
LH: loop header
LB: loop body
LE: loop exit
PB: predicated region body
PF: predicated region fallthrough
CT: control target
= control target key end

     0   :  { %8 = vsyncpa [#allocation3], 0  ;;  %s2298_s0 = inlined_call_operand.vmem [shape: f32[2,4,326], index: 0, kind: input, shape index: {}]   ;;  %s2299_s1 = inlined_call_operand.vmem [shape: f32[9,8,4], index: 1, kind: input, shape index: {}]   ;;  %s2300_s2 = inlined_call_operand.vmem [shape: f32[8,1], index: 2, kind: input, shape index: {}]   ;;  %s2301_s3 = inlined_call_operand.hbm [shape: f32[2,8,288], index: 3, kind: output, shape index: {}]  }
   0x1   :  { %10 = vsyncpa [#allocation3 + $0x1], 0  ;;  %s2049_s12 = smov 0   ;;  %s2051_s13 = smov 0  }
   0x2   :  { %s2053_s14 = smov 0   ;;  %s2055_s15 = smov 0  }
   0x3 LB: > { %s2070_s16 = sadd.s32 4294967295, %s2015_s15   ;;  %s1758_s17 = sadd.s32 4294967294, %s2015_s15   ;;  %s2015_s15 = sphi %s2055_s15, %s2307_s15   ;;  %s2011_s14 = sphi %s2053_s14, %s2306_s14   ;;  %s2007_s13 = sphi %s2051_s13, %s2305_s13   ;;  %s2003_s12 = sphi %s2049_s12, %s2304_s12  }
   0x4   : > { %s2074_s18 = sadd.s32 1, %s2015_s15   ;;  %s91_s19 = sadd.s32 1, %s2011_s14 }
   0x5   : > { %s88_s20 = ssub.s32 %s2015_s15, %s2074_s18  ;;  %p101_p0 = scmp.ne.s32.totalorder %s2011_s14, %s2007_s13 }
   0x6   : > { %p89_p1 = scmp.eq.s32.totalorder %s88_s20, 0  ;;  %p102_p2 = scmp.eq.s32.totalorder %s2070_s16, 1 }
   0x7   : > { %p107_p3 = scmp.ne.s32.totalorder %s2007_s13, %s2003_s12  ;;  %p108_p4 = scmp.eq.s32.totalorder %s1758_s17, 1 }
   0x8   : > { %s2085_s21 = scalar_select %p89_p1, %s2011_s14, %s91_s19  }
   0x9   : > { %p2087_p5 = por %p102_p2, %p101_p0  ;;  %p2091_p6 = por %p108_p4, %p107_p3 }
   0xa   : > { %p1761_p7 = scmp.ge.s32.totalorder %s2015_s15, 1  ;;  %p140_p8 = scmp.lt.s32.totalorder %s2015_s15, 3 }
   0xc   : > { %p141_p9 = pnand %p1761_p7, %p140_p8 }
   0xd   : > { %p164_p10 = scmp.lt.s32.totalorder (!%p141_p9), %s2070_s16, 1  ;;  %v2017_v0 = vmov (!%p141_p9), 0.0   ;;  %vm2018_vm0 = vmmov (!%p141_p9), 0   ;;  %s2019_s29 = smov (!%p141_p9), 127   ;;  %v1671_v11 = vld [vmem:[%s2300_s2] sm:$0xff] (!%p141_p9)  ;;  %v2027_v12 = vmov (!%p141_p9), 0  }
   0xe   : > { %144 = sbr.rel (%p141_p9) target bundleno = 444 (0x1bc), region = 32  ;;  %1837 = vmatprep.subr.mxu1 (!%p141_p9), %v2017_v0  ;;  %261 = vmatprep.mubr.f32.mxu0 (!%p141_p9), %v2017_v0  ;;  %s2020_s30 = smov (!%p141_p9), 126   ;;  %vm190_vm1 = vcmask (!%p141_p9), 1043456   ;;  %vm183_vm2 = vcmask (!%p141_p9), 1039360   ;;  %v1763_v18 = vld [vmem:[%s2299_s1 + $0x8] sm:$0xff] (!%p141_p9)  ;;  %vm186_vm3 = vcmask (!%p141_p9), 31744  }
   0xf   : > { %1839 = vmatprep.mubr.msk.f32.mxu1 (!%p141_p9), %vm2018_vm0, %v2017_v0  ;;  %s2021_s4 = smov (!%p141_p9), 110   ;;  %s2022_s5 = smov (!%p141_p9), 109   ;;  %1951 = vset.pattern.permute.xlu0 (!%p141_p9), %v2027_v12  ;;  %vm501_vm4 = vcmask (!%p141_p9), 1031168   ;;  %v171_v24 = vld [vmem:[%s2299_s1] sm:$0xff] (!%p141_p9)  ;;  %vm670_vm5 = vcmask (!%p141_p9), 900096   ;;  %v1774_v29 = vld [vmem:[%s2299_s1 + $0x10] sm:$0xff] (!%p141_p9) }
  0x10   : > { %s2023_s6 = smov (!%p141_p9), 108   ;;  %s2024_s7 = smov (!%p141_p9), 92   ;;  %v1780_v31 = vld [vmem:[%s2299_s1 + $0x18] sm:$0xff] (!%p141_p9)  ;;  %vm839_vm6 = vcmask (!%p141_p9), 891904   ;;  %v1786_v34 = vld [vmem:[%s2299_s1 + $0x20] sm:$0xff] (!%p141_p9)  ;;  %v1792_v39 = vld [vmem:[%s2299_s1 + $0x28] sm:$0xff] (!%p141_p9) }
  0x11   : > { %s2025_s8 = smov (!%p141_p9), 91   ;;  %s2026_s9 = smov (!%p141_p9), 90   ;;  %vm1008_vm7 = vcmask (!%p141_p9), 883712   ;;  %v1798_v46 = vld [vmem:[%s2299_s1 + $0x30] sm:$0xff] (!%p141_p9)  ;;  %vm1177_vm8 = vcmask (!%p141_p9), 752640   ;;  %v1804_v49 = vld [vmem:[%s2299_s1 + $0x38] sm:$0xff] (!%p141_p9) }
  0x12   : > { %v1810_v53 = vld [vmem:[%s2299_s1 + $0x40] sm:$0xff] (!%p141_p9)  ;;  %vm1346_vm9 = vcmask (!%p141_p9), 744448   ;;  %vm1515_vm10 = vcmask (!%p141_p9), 736256   ;;  %s161_s17 = sand.u32 (!%p141_p9), 1, %s2007_s13   ;;  %vm1682_vm11 = vcmask (!%p141_p9), 261120  }
  0x13   : > { %s1898_s19 = smul.u32 (!%p141_p9), 24, %s161_s17 }
  0x15   : > { %s165_s24 = scalar_select %p164_p10, %s2070_s16, 1 }
  0x16   : > { %s163_s20 = scalar_lea.vmem [#allocation2], %s1898_s19 }
  0x17   : > { %s1899_s25 = smul.u32 12, %s165_s24 }
  0x18   : > { %s1900_s24 = smul.u32 384, %s2070_s16  ;;  %s2028_s16 = smov [#allocation2]  }
  0x19   : > { %s2104_s28 = scalar_lea.vmem %s2298_s0, %s1899_s25  ;;  %s1699_s25 = sshll.u32 %s163_s20, 4  ;;  %s2258_s25 = int_to_ptr.vmem [resolvable:$true] %s1699_s25 }
  0x1a   : > { %v2109_v1 = vld [vmem:[%s2104_s28] sm:$0xff]  ;;  %v2115_v3 = vld [vmem:[%s2104_s28 + $0x8] sm:$0xf] }
  0x1b   : > { %177 = vrot.lane.b32.xlu1 %v2109_v1, %s2019_s29  ;;  %v176_v2 = vcombine.high %v2109_v1, %v2109_v1  ;;  %v489_v4 = vld [vmem:[%s2104_s28 + $0x8] sm:$0xf] }
  0x1c   : > { %v658_v5 = vld [vmem:[%s2104_s28 + $0x8] sm:$0xf] }
  0x1d   : > { %179 = vrot.lane.b32.xlu0 %v176_v2, %s2019_s29  ;;  %v827_v6 = vld [vmem:[%s2104_s28 + $0x8] sm:$0xf] }
  0x1e   : > { %v996_v7 = vld [vmem:[%s2104_s28 + $0x8] sm:$0xf] }
  0x1f   : > { %497 = vrot.lane.b32.xlu1 %v176_v2, %s2020_s30  ;;  %v1165_v8 = vld [vmem:[%s2104_s28 + $0x8] sm:$0xf] }
  0x20   : > { %v1334_v9 = vld [vmem:[%s2104_s28 + $0x8] sm:$0xf] }
  0x21   : > { %181 = vrot.lane.b32.xlu0 %v2115_v3, %s2019_s29  ;;  %v1503_v10 = vld [vmem:[%s2104_s28 + $0x8] sm:$0xf]  ;;  %s2256_s28 = scalar_lea.hbm %s2301_s3, %s1900_s24  ;;  %s1685_s29 = scalar_lea.sflag [#allocation3], %s161_s17 }
  0x23   : > { %495 = vrot.lane.b32.xlu1 %v2109_v1, %s2020_s30 }
  0x25   : > { %499 = vrot.lane.b32.xlu0 %v489_v4, %s2020_s30  ;;  %s1953_s30 = scalar_lea.vmem %s2258_s25, 384 }
  0x26   : > { %p1954_p11 = scmp.ne.s32.totalorder %s2258_s25, %s1953_s30 }
  0x27   : > { %668 = vrot.lane.b32.xlu1 %v658_v5, %s2021_s4 }
  0x28   : > { %p1955_p12 = pnand %p1954_p11, %p2087_p5 }
  0x29   : > { %666 = vrot.lane.b32.xlu0 %v176_v2, %s2021_s4 }
  0x2a   : > { %p1956_p13 = pneg %p1955_p12 }
  0x2b   : > { %835 = vrot.lane.b32.xlu1 %v176_v2, %s2022_s5 }
  0x2d   : > { %664 = vrot.lane.b32.xlu0 %v2109_v1, %s2021_s4  ;;  %s1957_s4 = sshll.u32 %s2028_s16, 4  ;;  %s1958_s4 = int_to_ptr.vmem [resolvable:$false] %s1957_s4 }
  0x2e   : > { %p1960_p0 = scmp.lt.s32.totalorder %s2258_s25, %s1958_s4 }
  0x2f   : > { %833 = vrot.lane.b32.xlu1 %v2109_v1, %s2022_s5 }
  0x31   : > { %837 = vrot.lane.b32.xlu0 %v827_v6, %s2022_s5  ;;  %s1959_s5 = scalar_lea.vmem %s1958_s4, 768 }
  0x32   : > { %p1961_p1 = scmp.lt.s32.totalorder %s1959_s5, %s1953_s30 }
  0x33   : > { %1006 = vrot.lane.b32.xlu1 %v996_v7, %s2023_s6 }
  0x34   : > { %p1962_p2 = por %p1961_p1, %p1960_p0 }
  0x35   : > { %1004 = vrot.lane.b32.xlu0 %v176_v2, %s2023_s6 }
  0x36   : > { %p1963_p3 = pnand %p1962_p2, %p1956_p13 }
  0x37   : > { %1173 = vrot.lane.b32.xlu1 %v176_v2, %s2024_s7 }
  0x39   : > { %1002 = vrot.lane.b32.xlu0 %v2109_v1, %s2023_s6 }
  0x3b   : > { %1171 = vrot.lane.b32.xlu1 %v2109_v1, %s2024_s7 }
  0x3d   : > { %1175 = vrot.lane.b32.xlu0 %v1165_v8, %s2024_s7 }
  0x3f   : > { %1344 = vrot.lane.b32.xlu1 %v1334_v9, %s2025_s8 }
  0x41   : > { %1342 = vrot.lane.b32.xlu0 %v176_v2, %s2025_s8 }
  0x43   : > { %1511 = vrot.lane.b32.xlu1 %v176_v2, %s2026_s9 }
  0x45   : > { %1340 = vrot.lane.b32.xlu0 %v2109_v1, %s2025_s8 }
  0x47   : > { %1509 = vrot.lane.b32.xlu1 %v2109_v1, %s2026_s9 }
  0x49   : > { %1513 = vrot.lane.b32.xlu0 %v1503_v10, %s2026_s9 }
  0x4d   : > { %1674 = vperm.xlu0 %1951, %v1671_v11  }
  0x8d   : > { %v178_v13 = vpop.permute.xlu1 %177 }
  0x8f   : > { %v180_v14 = vpop.permute.xlu0 %179 }
  0x90   : > { %v184_v19 = vsel %vm183_vm2, %v178_v13, %v180_v14 }
  0x91   : > { %v498_v15 = vpop.permute.xlu1 %497 }
  0x93   : > { %v182_v16 = vpop.permute.xlu0 %181 }
  0x94   : > { %1838 = vmatpush3.msk.msra.mxu1 %vm190_vm1, %v182_v16  ;;  %v185_v17 = vsel %vm183_vm2, %v180_v14, %v182_v16 }
  0x95   : > { %1764 = vmatprep.subr.msk.mxu0 %vm190_vm1, %v185_v17  ;;  %v496_v20 = vpop.permute.xlu1 %495  ;;  %1840 = vmatmul.mubr.msk.f32.vlgmr.msra.gmra.mrb[0].mxu1 %vm186_vm3, %v1763_v18 }
  0x96   : > { %1765 = vmatpush1.msk.msra.mxu0 %vm190_vm1, %v184_v19  ;;  %1842 = vmatprep.subr.mxu1 %v2017_v0  ;;  %v502_v26 = vsel %vm501_vm4, %v496_v20, %v498_v15 }
  0x97   : > { %1766 = vmatmul.mubr.msk.f32.vlgmr.msra.gmra.mrb[0].mxu0 %vm186_vm3, %v1763_v18  ;;  %1769 = vmatprep.subr.msk.mxu0 %vm190_vm1, %v176_v2  ;;  %v500_v21 = vpop.permute.xlu0 %499 }
  0x98   : > { %1770 = vmatpush1.msk.msra.mxu0 %vm190_vm1, %v2109_v1  ;;  %v503_v22 = vsel %vm501_vm4, %v498_v15, %v500_v21  ;;  %1843 = vmatpush3.msk.msra.mxu1 %vm190_vm1, %v2115_v3 }
  0x99   : > { %1775 = vmatprep.subr.msk.mxu0 %vm190_vm1, %v503_v22  ;;  %1844 = vmatprep.mubr.msk.f32.mxu1 %vm2018_vm0, %v2017_v0  ;;  %v669_v23 = vpop.permute.xlu1 %668 }
  0x9a   : > { %1847 = vmatprep.subr.mxu1 %v2017_v0  ;;  %411 = vmatprep.mubr.f32.mxu0 %v2017_v0 }
  0x9b   : > { %1845 = vmatmul.mubr.msk.f32.vlgmr.msra.gmra.mrb[2].mxu1 %vm186_vm3, %v171_v24  ;;  %v667_v25 = vpop.permute.xlu0 %666 }
  0x9c   : > { %1848 = vmatpush3.msk.msra.mxu1 %vm190_vm1, %v500_v21  ;;  %1849 = vmatprep.mubr.msk.f32.mxu1 %vm2018_vm0, %v2017_v0  ;;  %v672_v28 = vsel %vm670_vm5, %v667_v25, %v669_v23 }
  0x9d   : > { %1852 = vmatprep.subr.mxu1 %v2017_v0  ;;  %v836_v27 = vpop.permute.xlu1 %835 }
  0x9f   : > { %1771 = vmatmul.mubr.msk.f32.vlgmr.msra.gmra.mrb[0].mxu0 %vm186_vm3, %v171_v24  ;;  %v665_v30 = vpop.permute.xlu0 %664  ;;  %1850 = vmatmul.mubr.msk.f32.vlgmr.msra.gmra.mrb[4].mxu1 %vm186_vm3, %v1774_v29 }
  0xa0   : > { %1776 = vmatpush1.msk.msra.mxu0 %vm190_vm1, %v502_v26  ;;  %577 = vmatprep.mubr.f32.mxu0 %v2017_v0  ;;  %v671_v35 = vsel %vm670_vm5, %v665_v30, %v667_v25 }
  0xa1   : > { %1781 = vmatprep.subr.msk.mxu0 %vm190_vm1, %v672_v28  ;;  %1853 = vmatpush3.msk.msra.mxu1 %vm190_vm1, %v669_v23  ;;  %v834_v32 = vpop.permute.xlu1 %833 }
  0xa2   : > { %1854 = vmatprep.mubr.msk.f32.mxu1 %vm2018_vm0, %v2017_v0  ;;  %1857 = vmatprep.subr.mxu1 %v2017_v0  ;;  %v840_v42 = vsel %vm839_vm6, %v834_v32, %v836_v27 }
  0xa3   : > { %v838_v33 = vpop.permute.xlu0 %837  ;;  %1855 = vmatmul.mubr.msk.f32.vlgmr.msra.gmra.mrb[6].mxu1 %vm186_vm3, %v1780_v31 }
  0xa4   : > { %1858 = vmatpush3.msk.msra.mxu1 %vm190_vm1, %v838_v33  ;;  %1859 = vmatprep.mubr.msk.f32.mxu1 %vm2018_vm0, %v2017_v0  ;;  %v841_v37 = vsel %vm839_vm6, %v836_v27, %v838_v33 }
  0xa5   : > { %v1007_v36 = vpop.permute.xlu1 %1006  ;;  %1862 = vmatprep.subr.mxu1 %v2017_v0 }
  0xa7   : > { %1777 = vmatmul.mubr.msk.f32.vlgmr.msra.gmra.mrb[0].mxu0 %vm186_vm3, %v1774_v29  ;;  %v1005_v38 = vpop.permute.xlu0 %1004  ;;  %1860 = vmatmul.mubr.msk.f32.vlgmr.msra.gmra.mrb[8].mxu1 %vm186_vm3, %v1786_v34 }
  0xa8   : > { %1782 = vmatpush1.msk.msra.mxu0 %vm190_vm1, %v671_v35  ;;  %746 = vmatprep.mubr.f32.mxu0 %v2017_v0  ;;  %v1010_v44 = vsel %vm1008_vm7, %v1005_v38, %v1007_v36 }
  0xa9   : > { %1787 = vmatprep.subr.msk.mxu0 %vm190_vm1, %v841_v37  ;;  %v1174_v40 = vpop.permute.xlu1 %1173  ;;  %1863 = vmatpush3.msk.msra.mxu1 %vm190_vm1, %v1007_v36 }
  0xaa   : > { %1864 = vmatprep.mubr.msk.f32.mxu1 %vm2018_vm0, %v2017_v0  ;;  %1867 = vmatprep.subr.mxu1 %v2017_v0 }
  0xab   : > { %v1003_v41 = vpop.permute.xlu0 %1002  ;;  %1865 = vmatmul.mubr.msk.f32.vlgmr.msra.gmra.mrb[10].mxu1 %vm186_vm3, %v1792_v39 }
  0xac   : > { %1869 = vmatprep.mubr.msk.f32.mxu1 %vm2018_vm0, %v2017_v0  ;;  %v1009_v50 = vsel %vm1008_vm7, %v1003_v41, %v1005_v38 }
  0xad   : > { %v1172_v43 = vpop.permute.xlu1 %1171 }
  0xae   : > { %v1178_v55 = vsel %vm1177_vm8, %v1172_v43, %v1174_v40 }
  0xaf   : > { %1783 = vmatmul.mubr.msk.f32.vlgmr.msra.gmra.mrb[0].mxu0 %vm186_vm3, %v1780_v31  ;;  %v1176_v45 = vpop.permute.xlu0 %1175 }
  0xb0   : > { %1788 = vmatpush1.msk.msra.mxu0 %vm190_vm1, %v840_v42  ;;  %915 = vmatprep.mubr.f32.mxu0 %v2017_v0  ;;  %v1179_v51 = vsel %vm1177_vm8, %v1174_v40, %v1176_v45 }
  0xb1   : > { %1793 = vmatprep.subr.msk.mxu0 %vm190_vm1, %v1010_v44  ;;  %1868 = vmatpush3.msk.msra.mxu1 %vm190_vm1, %v1176_v45  ;;  %v1345_v47 = vpop.permute.xlu1 %1344 }
  0xb2   : > { %1870 = vmatmul.mubr.msk.f32.vlgmr.msra.gmra.mrb[12].mxu1 %vm186_vm3, %v1798_v46  ;;  %1872 = vmatprep.subr.mxu1 %v2017_v0 }
  0xb3   : > { %v1343_v48 = vpop.permute.xlu0 %1342  ;;  %1873 = vmatpush3.msk.msra.mxu1 %vm190_vm1, %v1345_v47  ;;  %1874 = vmatprep.mubr.msk.f32.mxu1 %vm2018_vm0, %v2017_v0 }
  0xb4   : > { %1877 = vmatprep.subr.mxu1 %v2017_v0  ;;  %v1348_v56 = vsel %vm1346_vm9, %v1343_v48, %v1345_v47 }
  0xb5   : > { %v1512_v57 = vpop.permute.xlu1 %1511 }
  0xb6   : > { %1875 = vmatmul.mubr.msk.f32.vlgmr.msra.gmra.mrb[14].mxu1 %vm186_vm3, %v1804_v49 }
  0xb7   : > { %1789 = vmatmul.mubr.msk.f32.vlgmr.msra.gmra.mrb[0].mxu0 %vm186_vm3, %v1786_v34  ;;  %v1341_v52 = vpop.permute.xlu0 %1340  ;;  %1879 = vmatprep.mubr.msk.f32.mxu1 %vm2018_vm0, %v2017_v0 }
  0xb8   : > { %1794 = vmatpush1.msk.msra.mxu0 %vm190_vm1, %v1009_v50  ;;  %1084 = vmatprep.mubr.f32.mxu0 %v2017_v0  ;;  %v1347_v58 = vsel %vm1346_vm9, %v1341_v52, %v1343_v48 }
  0xb9   : > { %1799 = vmatprep.subr.msk.mxu0 %vm190_vm1, %v1179_v51  ;;  %v1510_v60 = vpop.permute.xlu1 %1509 }
  0xba   : > { %v1516_v61 = vsel %vm1515_vm10, %v1510_v60, %v1512_v57 }
  0xbb   : > { %v1514_v54 = vpop.permute.xlu0 %1513 }
  0xbc   : > { %1878 = vmatpush3.msk.msra.mxu1 %vm190_vm1, %v1514_v54  ;;  %v1517_v59 = vsel %vm1515_vm10, %v1512_v57, %v1514_v54 }
  0xbd   : > { %1880 = vmatmul.mubr.msk.f32.vlgmr.msra.gmra.mrb[16].mxu1 %vm186_vm3, %v1810_v53 }
  0xbf   : > { %1795 = vmatmul.mubr.msk.f32.vlgmr.msra.gmra.mrb[0].mxu0 %vm186_vm3, %v1792_v39 }
  0xc0   : > { %1800 = vmatpush1.msk.msra.mxu0 %vm190_vm1, %v1178_v55  ;;  %1253 = vmatprep.mubr.f32.mxu0 %v2017_v0 }
  0xc1   : > { %1805 = vmatprep.subr.msk.mxu0 %vm190_vm1, %v1348_v56 }
  0xc7   : > { %1801 = vmatmul.mubr.msk.f32.vlgmr.msra.gmra.mrb[0].mxu0 %vm186_vm3, %v1798_v46 }
  0xc8   : > { %1806 = vmatpush1.msk.msra.mxu0 %vm190_vm1, %v1347_v58  ;;  %1422 = vmatprep.mubr.f32.mxu0 %v2017_v0 }
  0xc9   : > { %1811 = vmatprep.subr.msk.mxu0 %vm190_vm1, %v1517_v59 }
  0xcc   : > { %v1675_v22 = vpop.permute.xlu0 %1674 }
  0xcf   : > { %1807 = vmatmul.mubr.msk.f32.vlgmr.msra.gmra.mrb[0].mxu0 %vm186_vm3, %v1804_v49 }
  0xd0   : > { %1812 = vmatpush1.msk.msra.mxu0 %vm190_vm1, %v1516_v61  ;;  %1591 = vmatprep.mubr.f32.mxu0 %v2017_v0 }
  0xd7   : > { %1813 = vmatmul.mubr.msk.f32.vlgmr.msra.gmra.mrb[0].mxu0 %vm186_vm3, %v1810_v53 }
 0x168   : > { %v334_v62 = vpop.f32.mrb[0].mxu1 }
 0x169   : > { %v1841_v63 = vpop.f32.mrb[1].mxu1 }
 0x16e   : > { %v484_v1 = vpop.f32.mrb[2].mxu1 }
 0x16f   : > { %v485_v2 = vadd.f32 %v484_v1, %v334_v62  ;;  %v1846_v3 = vpop.f32.mrb[3].mxu1 }
 0x172   : > { %v650_v4 = vpop.f32.mrb[4].mxu1 }
 0x173   : > { %v656_v5 = vadd.f32 %v650_v4, %v485_v2  ;;  %v1851_v6 = vpop.f32.mrb[5].mxu1 }
 0x176   : > { %v819_v7 = vpop.f32.mrb[6].mxu1 }
 0x177   : > { %v825_v8 = vadd.f32 %v819_v7, %v656_v5  ;;  %v1856_v9 = vpop.f32.mrb[7].mxu1 }
 0x17a   : > { %v988_v10 = vpop.f32.mrb[8].mxu1 }
 0x17b   : > { %v994_v11 = vadd.f32 %v988_v10, %v825_v8  ;;  %v1861_v12 = vpop.f32.mrb[9].mxu1 }
 0x17e   : > { %v1157_v13 = vpop.f32.mrb[10].mxu1 }
 0x17f   : > { %v1163_v14 = vadd.f32 %v1157_v13, %v994_v11  ;;  %v1866_v0 = vpop.f32.mrb[11].mxu1 }
 0x185   : > { %v1326_v15 = vpop.f32.mrb[12].mxu1 }
 0x186   : > { %v1332_v16 = vadd.f32 %v1326_v15, %v1163_v14  ;;  %v1871_v17 = vpop.f32.mrb[13].mxu1 }
 0x189   : > { %v1495_v18 = vpop.f32.mrb[14].mxu1 }
 0x18a   : > { %v1501_v19 = vadd.f32 %v1495_v18, %v1332_v16  ;;  %v1876_v20 = vpop.f32.mrb[15].mxu1 }
 0x190   : > { %v1664_v21 = vpop.f32.mrb[16].mxu1 }
 0x191   : > { %v1670_v23 = vadd.f32 %v1664_v21, %v1501_v19  ;;  %v1881_v24 = vpop.f32.mrb[17].mxu1 }
 0x193   : > { %v1679_v25 = vadd.f32 %v1675_v22, %v1670_v23 }
 0x195   : > { %1683 = vst.msk [vmem:[%s163_s20 + $0x10] sm:$0xff] %vm1682_vm11, %v1679_v25 }
 0x1aa   : > { %v1593_v26 = vpop.f32.mrb[0].mxu0 }
 0x1ab   : > { %v1677_v27 = vadd.f32 %v1675_v22, %v1593_v26  ;;  %v1595_v28 = vpop.f32.mrb[1].mxu0 }
 0x1ac   : > { %v1678_v29 = vadd.f32 %v1675_v22, %v1595_v28 }
 0x1ad   : > { %1680 = vst [vmem:[%s163_s20] sm:$0xff] %v1677_v27 }
 0x1ae   : > { %1681 = vst [vmem:[%s163_s20 + $0x8] sm:$0xff] %v1678_v29 }
 0x1af   : > { %1966 = shalt.err (!%p1963_p3)
}
 0x1b0   : > { %s1967_s6 = scalar_lea.hbm %s2256_s28, 384  ;;  %s1971_s9 = scalar_lea.hbm %s2301_s3, 768 }
 0x1b1   : > { %p1968_p4 = scmp.ne.s32.totalorder %s2256_s28, %s1967_s6  ;;  %p1972_p9 = scmp.lt.u32.totalorder %s2256_s28, %s2301_s3 }
 0x1b2   : > { %p1973_p10 = scmp.lt.u32.totalorder %s1971_s9, %s1967_s6  ;;  %p1975_p12 = scmp.lt.u32.totalorder %s1967_s6, %s2256_s28 }
 0x1b3   : > { %p1969_p7 = pnand %p1968_p4, %p2087_p5 }
 0x1b4   : > { %p1974_p11 = por %p1973_p10, %p1972_p9 }
 0x1b5   : > { %p1970_p8 = pneg %p1969_p7 }
 0x1b6   : > { %p1976_p13 = por %p1975_p12, %p1974_p11 }
 0x1b8   : > { %p1977_p0 = pnand %p1976_p13, %p1970_p8 }
 0x1ba   : > { %1980 = shalt.err (!%p1977_p0)
}
 0x1bb   : > { %1901 = dma.vmem_to_hbm [thread:$0]  (%p2087_p5), %s2258_s25, 384, %s2256_s28, %s1685_s29  }
 0x1bc PF: > { %p1907_p1 = scmp.ge.s32.totalorder %s2015_s15, 2  ;;  %s1711_s17 = sand.u32 1, %s2003_s12  }
 0x1bd   : > { %s1712_s19 = scalar_lea.sflag [#allocation3], %s1711_s17 }
 0x1be   : > { %p1904_p2 = pnand %p1907_p1, %p2091_p6 }
 0x1c0   : > { %1998 = dma.done.wait (!%p1904_p2), %s1712_s19, 384  }
 0x1c1   : > { %2000 = vsyncadd (!%p1904_p2), %s1712_s19, 4294966912  ;;  %p13_p3 = scmp.ge.s32.totalorder %s2074_s18, 4   ;;  %s2304_s12 = smov %s2007_s13 }
 0x1c2   : > { %s2305_s13 = smov %s2011_s14  ;;  %s2306_s14 = smov %s2085_s21 }
 0x1c3   : > { %s2307_s15 = smov %s2074_s18  ;;  %15 = sbr.rel (!%p13_p3) target bundleno = 3 (0x3), region = 75 }
 0x1ca   :  { %1717 = vsyncpa [#allocation3], 1 }
 0x1cb   :  { %1719 = vsyncpa [#allocation3 + $0x1], 1 }

</bundles_post_ra>
